<compile_context>
chip_gen: v6e
topology: v6e:2x2x1
jax: 0.10.0
libtpu: 0.0.40
codegen_flags: <defaults>
</compile_context>

<pallas_src>
import jax
import jax.numpy as jnp
from jax.experimental import pallas as pl
from jax.experimental.pallas import tpu as pltpu

LANE = 128      # lane width: last-dim tile multiple for the resident weights
SUBLANE = 8     # f32 sublane multiple: batch-tile granularity


def _round_up(n, m):
    return ((n + m - 1) // m) * m


def qnet_kernel(x_ref, w1_ref, b1_ref, w2_ref, b2_ref, w3_ref, b3_ref, o_ref):
    """Fused MLP hot path: three MXU matmuls + VPU bias-add/ReLU, all in VMEM.

    Weights may be bf16; accumulation and the elementwise epilogue are f32.
    For f32 operands, use true-f32 matmul passes (Precision.HIGHEST).
    """
    cdt = w1_ref.dtype
    prec = jax.lax.Precision.HIGHEST if cdt == jnp.float32 else None

    x = x_ref[...].astype(cdt)                      # in-kernel cast; x streams as-is
    h1 = jnp.dot(x, w1_ref[...],
                 preferred_element_type=jnp.float32, precision=prec)
    h1 = jnp.maximum(h1 + b1_ref[...], 0.0)
    h2 = jnp.dot(h1.astype(cdt), w2_ref[...],
                 preferred_element_type=jnp.float32, precision=prec)
    h2 = jnp.maximum(h2 + b2_ref[...], 0.0)
    out = jnp.dot(h2.astype(cdt), w3_ref[...],
                  preferred_element_type=jnp.float32, precision=prec)
    o_ref[...] = (out + b3_ref[...]).astype(o_ref.dtype)


def prepare_params(params, compute_dtype=jnp.bfloat16):
    """One-time prep: pad the hidden dim of the resident weights to 128 lanes and
    cast weights to the compute dtype. Biases stay f32 for the epilogue.

    Padded rows/cols contribute exactly 0 to every matmul (bias pad = 0, ReLU(0)=0),
    so the math is identical to the unpadded network.
    """
    w1, b1, w2, b2, w3, b3 = params
    hidden = w1.shape[1]
    hid_p = _round_up(hidden, LANE)
    ph = hid_p - hidden
    f32 = jnp.float32
    w1p = jnp.pad(w1, ((0, 0), (0, ph))).astype(compute_dtype)   # (obs,   hid_p)
    w2p = jnp.pad(w2, ((0, ph), (0, ph))).astype(compute_dtype)  # (hid_p, hid_p)
    w3p = jnp.pad(w3, ((0, ph), (0, 0))).astype(compute_dtype)   # (hid_p, num_actions)
    b1p = jnp.pad(b1, ((0, 0), (0, ph))).astype(f32)             # (1, hid_p)
    b2p = jnp.pad(b2, ((0, 0), (0, ph))).astype(f32)             # (1, hid_p)
    b3p = b3.astype(f32)                                         # (1, num_actions)
    return (w1p, b1p, w2p, b2p, w3p, b3p)


def qnet_forward(x, prepped_params, *, batch_tile=2048):
    """Fused QNet forward. x: (B, num_observations). prepped_params: prepare_params()."""
    w1p, b1p, w2p, b2p, w3p, b3p = prepped_params
    B, obs = x.shape
    assert obs == w1p.shape[0], "x feature dim must match prepared w1 in-dim"
    num_actions = w3p.shape[1]

    # Batch tile: big enough that the ~0.35us fixed per-grid-step cost is amortized,
    # but capped at ceil(B/2) so there are >=2 grid steps for large B (two v7x TCs).
    tb = min(batch_tile, _round_up(pl.cdiv(B, 2), SUBLANE))
    tb = max(tb, SUBLANE)
    grid = (pl.cdiv(B, tb),)   # non-divisible last block is masked by Pallas

    def resident(arr):
        # Same block every grid step -> fetched once, stays VMEM-resident.
        return pl.BlockSpec(arr.shape, lambda i: (0, 0))

    return pl.pallas_call(
        qnet_kernel,
        out_shape=jax.ShapeDtypeStruct((B, num_actions), x.dtype),
        grid=grid,
        in_specs=[
            pl.BlockSpec((tb, obs), lambda i: (i, 0)),   # x: tiled over batch only
            resident(w1p), resident(b1p),
            resident(w2p), resident(b2p),
            resident(w3p), resident(b3p),
        ],
        out_specs=pl.BlockSpec((tb, num_actions), lambda i: (i, 0)),
        compiler_params=pltpu.CompilerParams(
            dimension_semantics=("parallel",)),          # shard batch across v7x TCs
    )(x, w1p, b1p, w2p, b2p, w3p, b3p)


def init_params(key, num_observations, num_actions, hidden_size, dtype=jnp.float32):
    """Deterministic init mimicking PyTorch nn.Linear default (U(-1/sqrt(fan_in), ...))."""
    keys = jax.random.split(key, 6)

    def linear(kw, kb, fan_in, fan_out):
        bound = 1.0 / jnp.sqrt(fan_in)
        # Stored transposed relative to PyTorch: (in, out)
        w = jax.random.uniform(kw, (fan_in, fan_out), dtype, -bound, bound)
        b = jax.random.uniform(kb, (1, fan_out), dtype, -bound, bound)
        return w, b

    w1, b1 = linear(keys[0], keys[1], num_observations, hidden_size)
    w2, b2 = linear(keys[2], keys[3], hidden_size, hidden_size)
    w3, b3 = linear(keys[4], keys[5], hidden_size, num_actions)
    return (w1, b1, w2, b2, w3, b3)


def qnet_reference(x, params):
    w1, b1, w2, b2, w3, b3 = params
    h = jnp.maximum(x @ w1 + b1, 0.0)
    h = jnp.maximum(h @ w2 + b2, 0.0)
    return h @ w3 + b3


if __name__ == "__main__":
    key = jax.random.PRNGKey(0)
    k_x, k_x2, k_p = jax.random.split(key, 3)

    num_observations = 16
    num_actions = 4
    hidden_size = 32
    params = init_params(k_p, num_observations, num_actions, hidden_size)

    fwd = jax.jit(qnet_forward)

    # Prepared (padded / cast) params: strict-f32 and default-bf16 variants.
    prepped_f32 = prepare_params(params, compute_dtype=jnp.float32)
    prepped_bf16 = prepare_params(params)   # bf16 operands, f32 accumulate/epilogue

    # --- small batch (single grid step), strict f32 ---
    batch = 8
    x = jax.random.normal(k_x, (batch, num_observations), jnp.float32)
    out = jax.block_until_ready(fwd(x, prepped_f32))
    ref = qnet_reference(x, params)
    assert out.shape == (batch, num_actions)
    assert jnp.allclose(out, ref, atol=1e-5, rtol=1e-5)

    # --- larger, non-multiple batch (exercises 2-step batch grid + masked tail), f32 ---
    batch2 = 260
    x2 = jax.random.normal(k_x2, (batch2, num_observations), jnp.float32)
    out2 = jax.block_until_ready(fwd(x2, prepped_f32))
    ref2 = qnet_reference(x2, params)
    assert out2.shape == (batch2, num_actions)
    assert jnp.allclose(out2, ref2, atol=1e-5, rtol=1e-5)

    # --- default bf16 operands (all generations), f32 accumulation -> loose tolerance ---
    out_bf16 = jax.block_until_ready(fwd(x2, prepped_bf16))
    assert out_bf16.shape == (batch2, num_actions)
    assert jnp.allclose(out_bf16, ref2, atol=1e-1, rtol=1e-1)

    print("KERNEL_OK")
</pallas_src>

<mosaic_0001>
module attributes {stable_mosaic.version = 11 : i64} {
  func.func @qnet_kernel(%arg0: i32, %arg1: memref<8x16xf32, #tpu.memory_space<vmem>>, %arg2: memref<16x128xf32, #tpu.memory_space<vmem>>, %arg3: memref<1x128xf32, #tpu.memory_space<vmem>>, %arg4: memref<128x128xf32, #tpu.memory_space<vmem>>, %arg5: memref<1x128xf32, #tpu.memory_space<vmem>>, %arg6: memref<128x4xf32, #tpu.memory_space<vmem>>, %arg7: memref<1x4xf32, #tpu.memory_space<vmem>>, %arg8: memref<8x4xf32, #tpu.memory_space<vmem>>) attributes {dimension_semantics = [#tpu.dimension_semantics<parallel>], iteration_bounds = array<i64: 1>, scalar_prefetch = 0 : i64, scratch_operands = 0 : i64, tpu.core_type = #tpu.core_type<tc>, window_params = [{transform_indices = @transform_0, window_bounds = array<i64: 8, 16>}, {pipeline_mode = #tpu.pipeline_mode<synchronous>, transform_indices = @transform_1, window_bounds = array<i64: 16, 128>}, {pipeline_mode = #tpu.pipeline_mode<synchronous>, transform_indices = @transform_2, window_bounds = array<i64: 1, 128>}, {pipeline_mode = #tpu.pipeline_mode<synchronous>, transform_indices = @transform_3, window_bounds = array<i64: 128, 128>}, {pipeline_mode = #tpu.pipeline_mode<synchronous>, transform_indices = @transform_4, window_bounds = array<i64: 1, 128>}, {pipeline_mode = #tpu.pipeline_mode<synchronous>, transform_indices = @transform_5, window_bounds = array<i64: 128, 4>}, {pipeline_mode = #tpu.pipeline_mode<synchronous>, transform_indices = @transform_6, window_bounds = array<i64: 1, 4>}, {transform_indices = @transform_7, window_bounds = array<i64: 8, 4>}]} {
    %c0 = arith.constant 0 : index
    %c0_0 = arith.constant 0 : index
    %0 = vector.load %arg1[%c0, %c0_0] : memref<8x16xf32, #tpu.memory_space<vmem>>, vector<8x16xf32>
    %c0_1 = arith.constant 0 : index
    %c0_2 = arith.constant 0 : index
    %1 = vector.load %arg2[%c0_1, %c0_2] : memref<16x128xf32, #tpu.memory_space<vmem>>, vector<16x128xf32>
    %cst = arith.constant dense<0.000000e+00> : vector<8x128xf32>
    %2 = tpu.matmul %0, %1, %cst {dimension_numbers = #tpu.dot_dimension_numbers<[1], [0], [0], [1], [0, 0, 1, 1], [], []>, precision = #tpu.contract_precision<fp32>} : vector<8x16xf32>, vector<16x128xf32>, vector<8x128xf32> -> vector<8x128xf32>
    %c0_3 = arith.constant 0 : index
    %c0_4 = arith.constant 0 : index
    %3 = vector.load %arg3[%c0_3, %c0_4] : memref<1x128xf32, #tpu.memory_space<vmem>>, vector<1x128xf32>
    %4 = vector.broadcast %3 : vector<1x128xf32> to vector<8x128xf32>
    %5 = arith.addf %2, %4 : vector<8x128xf32>
    %cst_5 = arith.constant 0.000000e+00 : f32
    %6 = vector.broadcast %cst_5 : f32 to vector<8x128xf32>
    %7 = arith.maximumf %5, %6 : vector<8x128xf32>
    %c0_6 = arith.constant 0 : index
    %c0_7 = arith.constant 0 : index
    %8 = vector.load %arg4[%c0_6, %c0_7] : memref<128x128xf32, #tpu.memory_space<vmem>>, vector<128x128xf32>
    %cst_8 = arith.constant dense<0.000000e+00> : vector<8x128xf32>
    %9 = tpu.matmul %7, %8, %cst_8 {dimension_numbers = #tpu.dot_dimension_numbers<[1], [0], [0], [1], [0, 0, 1, 1], [], []>, precision = #tpu.contract_precision<fp32>} : vector<8x128xf32>, vector<128x128xf32>, vector<8x128xf32> -> vector<8x128xf32>
    %c0_9 = arith.constant 0 : index
    %c0_10 = arith.constant 0 : index
    %10 = vector.load %arg5[%c0_9, %c0_10] : memref<1x128xf32, #tpu.memory_space<vmem>>, vector<1x128xf32>
    %11 = vector.broadcast %10 : vector<1x128xf32> to vector<8x128xf32>
    %12 = arith.addf %9, %11 : vector<8x128xf32>
    %cst_11 = arith.constant 0.000000e+00 : f32
    %13 = vector.broadcast %cst_11 : f32 to vector<8x128xf32>
    %14 = arith.maximumf %12, %13 : vector<8x128xf32>
    %c0_12 = arith.constant 0 : index
    %c0_13 = arith.constant 0 : index
    %15 = vector.load %arg6[%c0_12, %c0_13] : memref<128x4xf32, #tpu.memory_space<vmem>>, vector<128x4xf32>
    %cst_14 = arith.constant dense<0.000000e+00> : vector<8x4xf32>
    %16 = tpu.matmul %14, %15, %cst_14 {dimension_numbers = #tpu.dot_dimension_numbers<[1], [0], [0], [1], [0, 0, 1, 1], [], []>, precision = #tpu.contract_precision<fp32>} : vector<8x128xf32>, vector<128x4xf32>, vector<8x4xf32> -> vector<8x4xf32>
    %c0_15 = arith.constant 0 : index
    %c0_16 = arith.constant 0 : index
    %17 = vector.load %arg7[%c0_15, %c0_16] : memref<1x4xf32, #tpu.memory_space<vmem>>, vector<1x4xf32>
    %18 = vector.broadcast %17 : vector<1x4xf32> to vector<8x4xf32>
    %19 = arith.addf %16, %18 : vector<8x4xf32>
    %c0_17 = arith.constant 0 : index
    %c0_18 = arith.constant 0 : index
    %20 = vector.load %arg8[%c0_17, %c0_18] : memref<8x4xf32, #tpu.memory_space<vmem>>, vector<8x4xf32>
    tpu.vector_store %arg8[%c0_17, %c0_18], %19 {strides = array<i32>} : memref<8x4xf32, #tpu.memory_space<vmem>>, vector<8x4xf32>,
    return
  }
  func.func @transform_0(%arg0: i32) -> (i32, i32) {
    %c0_i32 = arith.constant 0 : i32
    %c0_i32_0 = arith.constant 0 : i32
    return %arg0, %c0_i32 : i32, i32
  }
  func.func @transform_1(%arg0: i32) -> (i32, i32) {
    %c0_i32 = arith.constant 0 : i32
    %c0_i32_0 = arith.constant 0 : i32
    %c0_i32_1 = arith.constant 0 : i32
    return %c0_i32, %c0_i32_0 : i32, i32
  }
  func.func @transform_2(%arg0: i32) -> (i32, i32) {
    %c0_i32 = arith.constant 0 : i32
    %c0_i32_0 = arith.constant 0 : i32
    %c0_i32_1 = arith.constant 0 : i32
    return %c0_i32, %c0_i32_0 : i32, i32
  }
  func.func @transform_3(%arg0: i32) -> (i32, i32) {
    %c0_i32 = arith.constant 0 : i32
    %c0_i32_0 = arith.constant 0 : i32
    %c0_i32_1 = arith.constant 0 : i32
    return %c0_i32, %c0_i32_0 : i32, i32
  }
  func.func @transform_4(%arg0: i32) -> (i32, i32) {
    %c0_i32 = arith.constant 0 : i32
    %c0_i32_0 = arith.constant 0 : i32
    %c0_i32_1 = arith.constant 0 : i32
    return %c0_i32, %c0_i32_0 : i32, i32
  }
  func.func @transform_5(%arg0: i32) -> (i32, i32) {
    %c0_i32 = arith.constant 0 : i32
    %c0_i32_0 = arith.constant 0 : i32
    %c0_i32_1 = arith.constant 0 : i32
    return %c0_i32, %c0_i32_0 : i32, i32
  }
  func.func @transform_6(%arg0: i32) -> (i32, i32) {
    %c0_i32 = arith.constant 0 : i32
    %c0_i32_0 = arith.constant 0 : i32
    %c0_i32_1 = arith.constant 0 : i32
    return %c0_i32, %c0_i32_0 : i32, i32
  }
  func.func @transform_7(%arg0: i32) -> (i32, i32) {
    %c0_i32 = arith.constant 0 : i32
    %c0_i32_0 = arith.constant 0 : i32
    return %arg0, %c0_i32 : i32, i32
  }
}

</mosaic_0001>

<bundles_post_ra>
// kernel: qnet_forward.1
= control target key start
LH: loop header
LB: loop body
LE: loop exit
PB: predicated region body
PF: predicated region fallthrough
CT: control target
= control target key end

     0   :  { %12 = vsyncpa [#allocation3], 0  ;;  %s3520_s0 = inlined_call_operand.vmem [shape: f32[8,16], index: 0, kind: input, shape index: {}]   ;;  %s3521_s1 = inlined_call_operand.hbm [shape: f32[16,128], index: 1, kind: input, shape index: {}]   ;;  %s3522_s2 = inlined_call_operand.vmem [shape: f32[1,128], index: 2, kind: input, shape index: {}]   ;;  %s3523_s3 = inlined_call_operand.vmem [shape: f32[128,128], index: 3, kind: input, shape index: {}]   ;;  %s3524_s4 = inlined_call_operand.hbm [shape: f32[1,128], index: 4, kind: input, shape index: {}]   ;;  %s3525_s5 = inlined_call_operand.vmem [shape: f32[128,4], index: 5, kind: input, shape index: {}]   ;;  %s3526_s6 = inlined_call_operand.vmem [shape: f32[1,4], index: 6, kind: input, shape index: {}]   ;;  %s3527_s7 = inlined_call_operand.vmem [shape: f32[8,4], index: 7, kind: output, shape index: {}]  }
   0x1   :  { %13 = vsyncpa [#allocation5], 0  ;;  %s2600_s24 = smov [#allocation2]  }
   0x2   :  { %s21_s25 = sshll.u32 %s2600_s24, 4  ;;  %s22_s25 = int_to_ptr.vmem [resolvable:$true] %s21_s25 }
   0x3   :  { %s2564_s26 = scalar_lea.vmem %s22_s25, 256  ;;  %p2569_p1 = scmp.lt.s32.totalorder %s22_s25, %s22_s25 }
   0x4   :  { %p2565_p0 = scmp.ne.s32.totalorder %s22_s25, %s2564_s26  ;;  %p2570_p2 = scmp.lt.s32.totalorder %s2564_s26, %s2564_s26 }
   0x6   :  { %p2571_p3 = por %p2570_p2, %p2569_p1 }
   0x8   :  { %p2572_p4 = pnand %p2571_p3, %p2565_p0 }
   0xa   :  { %2575 = shalt.err (!%p2572_p4)
}
   0xb   :  { %s2601_s27 = smov 128   ;;  %s2602_s28 = smov 8  }
   0xc   :  { %27 = dma.hbm_to_vmem [thread:$0]  %s3521_s1, 256, %s22_s25, [#allocation3], %s2601_s27, %s2601_s27, %s2602_s28  }
   0xd   :  { %s2603_s8 = smov [#allocation4]  }
   0xe   :  { %s38_s9 = sshll.u32 %s2603_s8, 4  ;;  %s39_s9 = int_to_ptr.vmem [resolvable:$true] %s38_s9 }
   0xf   :  { %s2584_s10 = scalar_lea.vmem %s39_s9, 16  ;;  %s2588_s11 = scalar_lea.vmem %s39_s9, 32 }
  0x10   :  { %p2585_p5 = scmp.ne.s32.totalorder %s39_s9, %s2584_s10  ;;  %p2589_p6 = scmp.lt.s32.totalorder %s39_s9, %s39_s9 }
  0x11   :  { %p2590_p7 = scmp.lt.s32.totalorder %s2588_s11, %s2584_s10 }
  0x13   :  { %p2591_p8 = por %p2590_p7, %p2589_p6 }
  0x15   :  { %p2592_p9 = pnand %p2591_p8, %p2585_p5 }
  0x17   :  { %2595 = shalt.err (!%p2592_p9)
}
  0x18   :  { %41 = dma.hbm_to_vmem [thread:$0]  %s3524_s4, 16, %s39_s9, [#allocation5]  }
  0x19   :  { %2596 = dma.done.wait [#allocation3], 256  }
  0x1a   :  { %2597 = vsyncadd [#allocation3], 4294967040 }
  0x1b   :  { %2598 = dma.done.wait [#allocation5], 16  }
  0x1c   :  { %2599 = vsyncadd [#allocation5], 4294967280  ;;  %v2604_v0 = vmov 0.0   ;;  %vm2605_vm0 = vmmov 0   ;;  %vm62_vm1 = vcmask 130048   ;;  %v54_v1 = vld [vmem:[#allocation2 + $0x8] sm:$0xff] }
  0x1d   :  { %2088 = vmatprep.subr.mxu0 %v2604_v0  ;;  %2095 = vmatprep.subr.mxu1 %v2604_v0  ;;  %v53_v2 = vld [vmem:[#allocation2] sm:$0xff]  ;;  %v2661_v4 = vand.u32 4294901760, %v54_v1  ;;  %v541_v10 = vld [vmem:[%s3523_s3 + $0x78] sm:$0xff]  ;;  %v540_v14 = vld [vmem:[%s3523_s3 + $0x70] sm:$0xff]  ;;  %vm1855_vm2 = vcmask 31744  }
  0x1e   :  { %2092 = vmatprep.mubr.msk.f32.mxu0 %vm2605_vm0, %v2604_v0  ;;  %2099 = vmatprep.mubr.msk.f32.mxu1 %vm2605_vm0, %v2604_v0  ;;  %v52_v3 = vld [vmem:[%s3520_s0] sm:$0xff]  ;;  %v2663_v5 = vand.u32 4294901760, %v53_v2  ;;  %v2680_v16 = vand.u32 4294901760, %v541_v10  ;;  %v539_v19 = vld [vmem:[%s3523_s3 + $0x68] sm:$0xff]  ;;  %v2685_v21 = vand.u32 4294901760, %v540_v14  ;;  %v537_v28 = vld [vmem:[%s3523_s3 + $0x58] sm:$0xff] }
  0x1f   :  { %v64_v6 = vsel %vm62_vm1, %v52_v3, 0  ;;  %2089 = vmatpush3.msra.mxu0 %v2661_v4  ;;  %v173_v8 = vsub.f32 %v54_v1, %v2661_v4  ;;  %v538_v24 = vld [vmem:[%s3523_s3 + $0x60] sm:$0xff]  ;;  %v2693_v27 = vand.u32 4294901760, %v539_v19  ;;  %v536_v31 = vld [vmem:[%s3523_s3 + $0x50] sm:$0xff]  ;;  %v2713_v34 = vand.u32 4294901760, %v537_v28  ;;  %v535_v35 = vld [vmem:[%s3523_s3 + $0x48] sm:$0xff] }
  0x20   :  { %v2665_v7 = vand.u32 4294901760, %v64_v6  ;;  %v180_v9 = vsub.f32 %v53_v2, %v2663_v5  ;;  %2090 = vmatprep.subr.mxu0 %v2604_v0  ;;  %v2691_v26 = vsub.f32 %v541_v10, %v2680_v16  ;;  %v2700_v29 = vsub.f32 %v540_v14, %v2685_v21  ;;  %v534_v39 = vld [vmem:[%s3523_s3 + $0x40] sm:$0xff]  ;;  %v531_v10 = vld [vmem:[%s3523_s3 + $0x28] sm:$0xff] }
  0x21   :  { %2091 = vmatpush3.msra.mxu0 %v2663_v5  ;;  %v174_v12 = vand.u32 4294901760, %v173_v8  ;;  %v2702_v30 = vand.u32 4294901760, %v538_v24  ;;  %v2711_v33 = vsub.f32 %v539_v19, %v2693_v27  ;;  %v2726_v38 = vand.u32 4294901760, %v536_v31  ;;  %v530_v14 = vld [vmem:[%s3523_s3 + $0x20] sm:$0xff] }
  0x22   :  { %v134_v11 = vsub.f32 %v64_v6, %v2665_v7  ;;  %v181_v13 = vand.u32 4294901760, %v180_v9  ;;  %2102 = vmatprep.subr.mxu0 %v2604_v0  ;;  %v643_v32 = vand.u32 4294901760, %v2691_v26  ;;  %v650_v36 = vand.u32 4294901760, %v2700_v29 }
  0x23   :  { %v175_v17 = vsub.f32 %v173_v8, %v174_v12  ;;  %v2724_v37 = vsub.f32 %v538_v24, %v2702_v30  ;;  %v657_v41 = vand.u32 4294901760, %v2711_v33  ;;  %v2739_v42 = vsub.f32 %v537_v28, %v2713_v34 }
  0x24   :  { %v135_v15 = vand.u32 4294901760, %v134_v11  ;;  %v182_v18 = vsub.f32 %v180_v9, %v181_v13  ;;  %v644_v40 = vsub.f32 %v2691_v26, %v643_v32  ;;  %v2741_v43 = vand.u32 4294901760, %v535_v35 }
  0x25   :  { %v176_v22 = vand.u32 4294901760, %v175_v17  ;;  %v651_v44 = vsub.f32 %v2700_v29, %v650_v36  ;;  %v664_v45 = vand.u32 4294901760, %v2724_v37  ;;  %v2751_v46 = vsub.f32 %v536_v31, %v2726_v38  ;;  %v528_v31 = vld [vmem:[%s3523_s3 + $0x10] sm:$0xff] }
  0x26   :  { %v136_v20 = vsub.f32 %v134_v11, %v135_v15  ;;  %v183_v23 = vand.u32 4294901760, %v182_v18  ;;  %v2753_v47 = vand.u32 4294901760, %v534_v39  ;;  %v645_v48 = vand.u32 4294901760, %v644_v40 }
  0x27   :  { %2096 = vmatpush3.msra.mxu1 %v176_v22  ;;  %v658_v49 = vsub.f32 %v2711_v33, %v657_v41  ;;  %v671_v50 = vand.u32 4294901760, %v2739_v42  ;;  %v2764_v51 = vsub.f32 %v535_v35, %v2741_v43  ;;  %v652_v52 = vand.u32 4294901760, %v651_v44 }
  0x28   :  { %v137_v25 = vand.u32 4294901760, %v136_v20  ;;  %2097 = vmatprep.subr.mxu1 %v2604_v0  ;;  %v665_v53 = vsub.f32 %v2724_v37, %v664_v45  ;;  %v678_v54 = vand.u32 4294901760, %v2751_v46  ;;  %v2776_v55 = vsub.f32 %v534_v39, %v2753_v47  ;;  %v529_v20 = vld [vmem:[%s3523_s3 + $0x18] sm:$0xff] }
  0x29   :  { %2098 = vmatpush3.msra.mxu1 %v183_v23  ;;  %v659_v56 = vand.u32 4294901760, %v658_v49  ;;  %v672_v57 = vsub.f32 %v2739_v42, %v671_v50  ;;  %v685_v58 = vand.u32 4294901760, %v2764_v51  ;;  %v2859_v19 = vand.u32 4294901760, %v530_v14  ;;  %v527_v49 = vld [vmem:[%s3523_s3 + $0x8] sm:$0xff] }
  0x2a   :  { %2093 = vmatmul.mubr.f32.vlgmr.msra.gmra.mxu0 %v137_v25  ;;  %2100 = vmatmul.mubr.f32.vlgmr.msra.gmra.mxu1 %v2665_v7  ;;  %v666_v59 = vand.u32 4294901760, %v665_v53  ;;  %v679_v60 = vsub.f32 %v2751_v46, %v678_v54  ;;  %v692_v61 = vand.u32 4294901760, %v2776_v55  ;;  %v2874_v28 = vand.u32 4294901760, %v529_v20 }
  0x2b   :  { %2103 = vmatpush3.msra.mxu0 %v173_v8  ;;  %2109 = vmatprep.subr.mxu1 %v2604_v0  ;;  %v673_v62 = vand.u32 4294901760, %v672_v57  ;;  %v686_v63 = vsub.f32 %v2764_v51, %v685_v58  ;;  %v2871_v25 = vsub.f32 %v530_v14, %v2859_v19  ;;  %v2884_v44 = vand.u32 4294901760, %v528_v31 }
  0x2c   :  { %2104 = vmatprep.subr.mxu0 %v2604_v0  ;;  %2106 = vmatprep.mubr.msk.f32.mxu0 %vm2605_vm0, %v2604_v0  ;;  %v680_v1 = vand.u32 4294901760, %v679_v60  ;;  %v693_v2 = vsub.f32 %v2776_v55, %v692_v61  ;;  %v2900_v57 = vand.u32 4294901760, %v527_v49  ;;  %v526_v60 = vld [vmem:[%s3523_s3] sm:$0xff] }
  0x2d   :  { %2105 = vmatpush3.msra.mxu0 %v180_v9  ;;  %2110 = vmatpush3.msra.mxu1 %v2661_v4  ;;  %v687_v3 = vand.u32 4294901760, %v686_v63  ;;  %v3532_v40 = vand.u32 4294901760, %v2871_v25 }
  0x2e   :  { %2107 = vmatmul.mubr.f32.vlgmr.msra.gmra.mxu0 %v134_v11  ;;  %2111 = vmatprep.subr.mxu1 %v2604_v0 }
  0x2f   :  { %2116 = vmatprep.subr.mxu0 %v2604_v0  ;;  %2112 = vmatpush3.msra.mxu1 %v2663_v5  ;;  %v721_v53 = vsub.f32 %v2871_v25, %v3532_v40 }
  0x30   :  { %2113 = vmatprep.mubr.msk.f32.mxu1 %vm2605_vm0, %v2604_v0  ;;  %2117 = vmatpush3.msra.mxu0 %v174_v12 }
  0x31   :  { %2114 = vmatmul.mubr.f32.vlgmr.msra.gmra.mxu1 %v135_v15  ;;  %2118 = vmatprep.subr.mxu0 %v2604_v0 }
  0x32   :  { %2123 = vmatprep.subr.mxu1 %v2604_v0  ;;  %2119 = vmatpush3.msra.mxu0 %v181_v13  ;;  %v2845_v13 = vand.u32 4294901760, %v531_v10 }
  0x33   :  { %2120 = vmatprep.mubr.msk.f32.mxu0 %vm2605_vm0, %v2604_v0  ;;  %2124 = vmatpush3.msra.mxu1 %v2661_v4  ;;  %v694_v4 = vand.u32 4294901760, %v693_v2  ;;  %v2913_v2 = vand.u32 4294901760, %v526_v60 }
  0x34   :  { %2121 = vmatmul.mubr.f32.vlgmr.msra.gmra.mxu0 %v2665_v7  ;;  %2125 = vmatprep.subr.mxu1 %v2604_v0  ;;  %v2857_v18 = vsub.f32 %v531_v10, %v2845_v13 }
  0x35   :  { %2126 = vmatpush3.msra.mxu1 %v2663_v5  ;;  %2127 = vmatprep.mubr.msk.f32.mxu1 %vm2605_vm0, %v2604_v0  ;;  %v533_v5 = vld [vmem:[%s3523_s3 + $0x38] sm:$0xff] }
  0x36   :  { %2128 = vmatmul.mubr.f32.vlgmr.msra.gmra.mxu1 %v2665_v7  ;;  %2165 = vmatprep.subr.mxu1 %v2604_v0  ;;  %v2826_v6 = vand.u32 4294901760, %v533_v5  ;;  %v532_v7 = vld [vmem:[%s3523_s3 + $0x30] sm:$0xff]  ;;  %v3533_v24 = vand.u32 4294901760, %v2857_v18 }
  0x37   :  { %2166 = vmatpush3.msra.mxu1 %v645_v48  ;;  %2130 = vmatprep.subr.mxu0 %v2604_v0  ;;  %v2834_v9 = vand.u32 4294901760, %v532_v7  ;;  %v2888_v48 = vsub.f32 %v529_v20, %v2874_v28 }
  0x38   :  { %2167 = vmatprep.subr.mxu1 %v2604_v0  ;;  %2131 = vmatpush3.msra.mxu0 %v2680_v16  ;;  %v2832_v8 = vsub.f32 %v533_v5, %v2826_v6  ;;  %v714_v39 = vsub.f32 %v2857_v18, %v3533_v24 }
  0x39   :  { %2168 = vmatpush3.msra.mxu1 %v652_v52  ;;  %2132 = vmatprep.subr.mxu0 %v2604_v0  ;;  %v2843_v12 = vsub.f32 %v532_v7, %v2834_v9  ;;  %v2926_v7 = vsub.f32 %v526_v60, %v2913_v2 }
  0x3a   :  { %2169 = vmatprep.subr.mxu1 %v2604_v0  ;;  %2133 = vmatpush3.msra.mxu0 %v2685_v21  ;;  %v699_v11 = vand.u32 4294901760, %v2832_v8  ;;  %v715_v52 = vand.u32 4294901760, %v714_v39 }
  0x3b   :  { %2170 = vmatpush3.msra.mxu1 %v659_v56  ;;  %2134 = vmatprep.subr.mxu0 %v2604_v0  ;;  %v706_v17 = vand.u32 4294901760, %v2843_v12  ;;  %v2898_v56 = vsub.f32 %v528_v31, %v2884_v44  ;;  %v3528_v20 = vand.u32 4294901760, %v2926_v7 }
  0x3c   :  { %2171 = vmatprep.subr.mxu1 %v2604_v0  ;;  %2135 = vmatpush3.msra.mxu0 %v2693_v27  ;;  %v700_v15 = vsub.f32 %v2832_v8, %v699_v11 }
  0x3d   :  { %2172 = vmatpush3.msra.mxu1 %v666_v59  ;;  %2136 = vmatprep.subr.mxu0 %v2604_v0  ;;  %v707_v23 = vsub.f32 %v2843_v12, %v706_v17  ;;  %v3531_v59 = vand.u32 4294901760, %v2888_v48  ;;  %v3530_v63 = vand.u32 4294901760, %v2898_v56 }
  0x3e   :  { %2173 = vmatprep.subr.mxu1 %v2604_v0  ;;  %2137 = vmatpush3.msra.mxu0 %v2702_v30  ;;  %v701_v22 = vand.u32 4294901760, %v700_v15 }
  0x3f   :  { %2174 = vmatpush3.msra.mxu1 %v673_v62  ;;  %2138 = vmatprep.subr.mxu0 %v2604_v0  ;;  %v708_v35 = vand.u32 4294901760, %v707_v23  ;;  %v722_v62 = vand.u32 4294901760, %v721_v53  ;;  %v749_v23 = vsub.f32 %v2926_v7, %v3528_v20 }
  0x40   :  { %2175 = vmatprep.subr.mxu1 %v2604_v0  ;;  %2139 = vmatpush3.msra.mxu0 %v2713_v34 }
  0x41   :  { %2176 = vmatpush3.msra.mxu1 %v680_v1  ;;  %2140 = vmatprep.subr.mxu0 %v2604_v0  ;;  %v2911_v1 = vsub.f32 %v527_v49, %v2900_v57  ;;  %v750_v31 = vand.u32 4294901760, %v749_v23 }
  0x42   :  { %2177 = vmatprep.subr.mxu1 %v2604_v0  ;;  %2141 = vmatpush3.msra.mxu0 %v2726_v38 }
  0x43   :  { %2178 = vmatpush3.msra.mxu1 %v687_v3  ;;  %2142 = vmatprep.subr.mxu0 %v2604_v0  ;;  %v728_v3 = vsub.f32 %v2888_v48, %v3531_v59  ;;  %v3529_v5 = vand.u32 4294901760, %v2911_v1 }
  0x44   :  { %2179 = vmatprep.subr.mxu1 %v2604_v0  ;;  %2143 = vmatpush3.msra.mxu0 %v2741_v43 }
  0x45   :  { %2180 = vmatpush3.msra.mxu1 %v694_v4  ;;  %2144 = vmatprep.subr.mxu0 %v2604_v0  ;;  %v735_v4 = vsub.f32 %v2898_v56, %v3530_v63  ;;  %v729_v10 = vand.u32 4294901760, %v728_v3  ;;  %v742_v15 = vsub.f32 %v2911_v1, %v3529_v5 }
  0x46   :  { %2181 = vmatprep.subr.mxu1 %v2604_v0  ;;  %2145 = vmatpush3.msra.mxu0 %v2753_v47 }
  0x47   :  { %2146 = vmatprep.subr.mxu0 %v2604_v0  ;;  %2197 = vmatprep.mubr.msk.f32.mxu1 %vm2605_vm0, %v2604_v0  ;;  %v736_v14 = vand.u32 4294901760, %v735_v4 }
  0x48   :  { %2162 = vmatprep.mubr.msk.f32.mxu0 %vm2605_vm0, %v2604_v0  ;;  %2147 = vmatpush3.msra.mxu0 %v2826_v6 }
  0x49   :  { %2148 = vmatprep.subr.mxu0 %v2604_v0  ;;  %2182 = vmatpush3.msra.mxu1 %v701_v22  ;;  %v743_v22 = vand.u32 4294901760, %v742_v15 }
  0x4a   :  { %2149 = vmatpush3.msra.mxu0 %v2834_v9  ;;  %2183 = vmatprep.subr.mxu1 %v2604_v0 }
  0x4b   :  { %2150 = vmatprep.subr.mxu0 %v2604_v0  ;;  %2184 = vmatpush3.msra.mxu1 %v708_v35  ;;  %v1863_v35 = vld [vmem:[%s3522_s2] ss:$0 sm:$0xff] }
  0x4c   :  { %2151 = vmatpush3.msra.mxu0 %v2845_v13  ;;  %2185 = vmatprep.subr.mxu1 %v2604_v0 }
  0x4d   :  { %2152 = vmatprep.subr.mxu0 %v2604_v0  ;;  %2186 = vmatpush3.msra.mxu1 %v715_v52 }
  0x4e   :  { %2153 = vmatpush3.msra.mxu0 %v2859_v19  ;;  %2187 = vmatprep.subr.mxu1 %v2604_v0 }
  0x4f   :  { %2154 = vmatprep.subr.mxu0 %v2604_v0  ;;  %2188 = vmatpush3.msra.mxu1 %v722_v62 }
  0x50   :  { %2155 = vmatpush3.msra.mxu0 %v2874_v28  ;;  %2189 = vmatprep.subr.mxu1 %v2604_v0 }
  0x51   :  { %2156 = vmatprep.subr.mxu0 %v2604_v0  ;;  %2190 = vmatpush3.msra.mxu1 %v729_v10 }
  0x52   :  { %2157 = vmatpush3.msra.mxu0 %v2884_v44  ;;  %2191 = vmatprep.subr.mxu1 %v2604_v0 }
  0x53   :  { %2158 = vmatprep.subr.mxu0 %v2604_v0  ;;  %2192 = vmatpush3.msra.mxu1 %v736_v14 }
  0x54   :  { %2159 = vmatpush3.msra.mxu0 %v2900_v57  ;;  %2193 = vmatprep.subr.mxu1 %v2604_v0 }
  0x55   :  { %2160 = vmatprep.subr.mxu0 %v2604_v0  ;;  %2194 = vmatpush3.msra.mxu1 %v743_v22 }
  0x56   :  { %2161 = vmatpush3.msra.mxu0 %v2913_v2  ;;  %2195 = vmatprep.subr.mxu1 %v2604_v0 }
  0x57   :  { %2200 = vmatprep.subr.mxu0 %v2604_v0  ;;  %2196 = vmatpush3.msra.mxu1 %v750_v31 }
  0x58   :  { %2235 = vmatprep.subr.mxu1 %v2604_v0 }
  0xea   :  { %v139_v39 = vpop.f32.mrf.mxu0  ;;  %v220_v53 = vpop.f32.mrf.mxu1 }
  0xeb   :  { %v140_v49 = vadd.f32 %v1863_v35, %v139_v39 }
  0xec   :  { %v2094_v52 = vpop.f32.mrf.mxu0  ;;  %v2101_v62 = vpop.f32.mrf.mxu1 }
  0xed   :  { %v221_v60 = vadd.f32 %v220_v53, %v140_v49  ;;  %v1198_v62 = vld [vmem:[%s3525_s5 + $0x38] sm:$0xff] }
  0xee   :  { %v296_v3 = vpop.f32.mrf.mxu0 }
  0xef   :  { %v297_v4 = vadd.f32 %v296_v3, %v221_v60 }
  0xf0   :  { %v2108_v10 = vpop.f32.mrf.mxu0 }
  0xf1   :  { %v371_v14 = vpop.f32.mrf.mxu1  ;;  %v3229_v10 = vand.u32 4294901760, %v1198_v62 }
  0xf2   :  { %v372_v15 = vadd.f32 %v371_v14, %v297_v4  ;;  %v1197_v14 = vld [vmem:[%s3525_s5 + $0x30] sm:$0xff] }
  0xf3   :  { %v2115_v22 = vpop.f32.mrf.mxu1 }
  0xf4   :  { %v448_v23 = vpop.f32.mrf.mxu0  ;;  %v3238_v22 = vsub.f32 %v1198_v62, %v3229_v10 }
  0xf5   :  { %v449_v31 = vadd.f32 %v448_v23, %v372_v15  ;;  %v3240_v23 = vand.u32 4294901760, %v1197_v14 }
  0xf6   :  { %v2122_v20 = vpop.f32.mrf.mxu0  ;;  %v521_v5 = vpop.f32.mrf.mxu1 }
  0xf7   :  { %v522_v63 = vadd.f32 %v521_v5, %v449_v31  ;;  %v1196_v31 = vld [vmem:[%s3525_s5 + $0x28] sm:$0xff] }
  0xf8   :  { %v2129_v59 = vpop.f32.mrf.mxu1 }
  0xf9   :  { %v525_v40 = vmax.f32 %v522_v63, 0.0 }
  0xfb   :  { %v2946_v24 = vand.u32 4294901760, %v525_v40 }
  0xfd   :  { %v2949_v35 = vsub.f32 %v525_v40, %v2946_v24  ;;  %2198 = vmatmul.mubr.f32.vlgmr.msra.gmra.mxu1 %v2946_v24 }
  0xfe   :  { %2236 = vmatpush3.msra.mxu1 %v2680_v16  ;;  %2267 = vmatprep.mubr.msk.f32.mxu1 %vm2605_vm0, %v2604_v0 }
  0xff   :  { %v632_v39 = vand.u32 4294901760, %v2949_v35  ;;  %2237 = vmatprep.subr.mxu1 %v2604_v0 }
 0x100   :  { %2238 = vmatpush3.msra.mxu1 %v2685_v21 }
 0x101   :  { %v633_v59 = vsub.f32 %v2949_v35, %v632_v39  ;;  %2239 = vmatprep.subr.mxu1 %v2604_v0 }
 0x102   :  { %2240 = vmatpush3.msra.mxu1 %v2693_v27 }
 0x103   :  { %2241 = vmatprep.subr.mxu1 %v2604_v0  ;;  %v634_v40 = vand.u32 4294901760, %v633_v59  ;;  %v3250_v59 = vsub.f32 %v1197_v14, %v3240_v23 }
 0x104   :  { %2242 = vmatpush3.msra.mxu1 %v2702_v30 }
 0x105   :  { %2243 = vmatprep.subr.mxu1 %v2604_v0  ;;  %2163 = vmatmul.mubr.f32.vlgmr.msra.gmra.mxu0 %v634_v40  ;;  %v3252_v40 = vand.u32 4294901760, %v1196_v31 }
 0x106   :  { %2201 = vmatpush3.msra.mxu0 %v2691_v26  ;;  %2244 = vmatpush3.msra.mxu1 %v2713_v34  ;;  %v3542_v26 = vand.u32 4294901760, %v2888_v48 }
 0x107   :  { %2202 = vmatprep.subr.mxu0 %v2604_v0  ;;  %2245 = vmatprep.subr.mxu1 %v2604_v0 }
 0x108   :  { %2203 = vmatpush3.msra.mxu0 %v2700_v29  ;;  %2246 = vmatpush3.msra.mxu1 %v2726_v38  ;;  %v3544_v29 = vand.u32 4294901760, %v2911_v1 }
 0x109   :  { %2204 = vmatprep.subr.mxu0 %v2604_v0  ;;  %2247 = vmatprep.subr.mxu1 %v2604_v0 }
 0x10a   :  { %2205 = vmatpush3.msra.mxu0 %v2711_v33  ;;  %2248 = vmatpush3.msra.mxu1 %v2741_v43 }
 0x10b   :  { %2206 = vmatprep.subr.mxu0 %v2604_v0  ;;  %2249 = vmatprep.subr.mxu1 %v2604_v0 }
 0x10c   :  { %2207 = vmatpush3.msra.mxu0 %v2724_v37  ;;  %2250 = vmatpush3.msra.mxu1 %v2753_v47 }
 0x10d   :  { %2208 = vmatprep.subr.mxu0 %v2604_v0  ;;  %2251 = vmatprep.subr.mxu1 %v2604_v0 }
 0x10e   :  { %2209 = vmatpush3.msra.mxu0 %v2739_v42  ;;  %2252 = vmatpush3.msra.mxu1 %v2826_v6  ;;  %v1202_v42 = vld [vmem:[%s3525_s5 + $0x58] sm:$0xff] }
 0x10f   :  { %2210 = vmatprep.subr.mxu0 %v2604_v0  ;;  %2253 = vmatprep.subr.mxu1 %v2604_v0 }
 0x110   :  { %2211 = vmatpush3.msra.mxu0 %v2751_v46  ;;  %2254 = vmatpush3.msra.mxu1 %v2834_v9  ;;  %v3140_v46 = vand.u32 4294901760, %v1202_v42 }
 0x111   :  { %2212 = vmatprep.subr.mxu0 %v2604_v0  ;;  %2255 = vmatprep.subr.mxu1 %v2604_v0 }
 0x112   :  { %2213 = vmatpush3.msra.mxu0 %v2764_v51  ;;  %2256 = vmatpush3.msra.mxu1 %v2845_v13  ;;  %v1199_v51 = vld [vmem:[%s3525_s5 + $0x40] sm:$0xff] }
 0x113   :  { %2214 = vmatprep.subr.mxu0 %v2604_v0  ;;  %2257 = vmatprep.subr.mxu1 %v2604_v0 }
 0x114   :  { %2215 = vmatpush3.msra.mxu0 %v2776_v55  ;;  %2258 = vmatpush3.msra.mxu1 %v2859_v19 }
 0x115   :  { %2216 = vmatprep.subr.mxu0 %v2604_v0  ;;  %2259 = vmatprep.subr.mxu1 %v2604_v0 }
 0x116   :  { %2217 = vmatpush3.msra.mxu0 %v2832_v8  ;;  %2260 = vmatpush3.msra.mxu1 %v2874_v28 }
 0x117   :  { %2218 = vmatprep.subr.mxu0 %v2604_v0  ;;  %2261 = vmatprep.subr.mxu1 %v2604_v0 }
 0x118   :  { %2219 = vmatpush3.msra.mxu0 %v2843_v12  ;;  %2262 = vmatpush3.msra.mxu1 %v2884_v44 }
 0x119   :  { %2220 = vmatprep.subr.mxu0 %v2604_v0  ;;  %2263 = vmatprep.subr.mxu1 %v2604_v0 }
 0x11a   :  { %2221 = vmatpush3.msra.mxu0 %v2857_v18  ;;  %2264 = vmatpush3.msra.mxu1 %v2900_v57 }
 0x11b   :  { %2222 = vmatprep.subr.mxu0 %v2604_v0  ;;  %2265 = vmatprep.subr.mxu1 %v2604_v0 }
 0x11c   :  { %2223 = vmatpush3.msra.mxu0 %v2871_v25  ;;  %2266 = vmatpush3.msra.mxu1 %v2913_v2 }
 0x11d   :  { %2224 = vmatprep.subr.mxu0 %v2604_v0  ;;  %2268 = vmatmul.mubr.f32.vlgmr.msra.gmra.mxu1 %v632_v39  ;;  %v1364_v39 = vand.u32 4294901760, %v3238_v22 }
 0x11e   :  { %2305 = vmatprep.subr.mxu1 %v2604_v0  ;;  %2225 = vmatpush3.msra.mxu0 %v2888_v48 }
 0x11f   :  { %2306 = vmatpush3.msra.mxu1 %v2680_v16  ;;  %2226 = vmatprep.subr.mxu0 %v2604_v0  ;;  %v3540_v16 = vand.u32 4294901760, %v2857_v18 }
 0x120   :  { %2307 = vmatprep.subr.mxu1 %v2604_v0  ;;  %2227 = vmatpush3.msra.mxu0 %v2898_v56 }
 0x121   :  { %2308 = vmatpush3.msra.mxu1 %v2685_v21  ;;  %2228 = vmatprep.subr.mxu0 %v2604_v0  ;;  %v3541_v21 = vand.u32 4294901760, %v2871_v25 }
 0x122   :  { %2309 = vmatprep.subr.mxu1 %v2604_v0  ;;  %2229 = vmatpush3.msra.mxu0 %v2911_v1 }
 0x123   :  { %2310 = vmatpush3.msra.mxu1 %v2693_v27  ;;  %2230 = vmatprep.subr.mxu0 %v2604_v0  ;;  %v3543_v27 = vand.u32 4294901760, %v2898_v56 }
 0x124   :  { %2311 = vmatprep.subr.mxu1 %v2604_v0  ;;  %2231 = vmatpush3.msra.mxu0 %v2926_v7 }
 0x125   :  { %2232 = vmatprep.mubr.msk.f32.mxu0 %vm2605_vm0, %v2604_v0  ;;  %2312 = vmatpush3.msra.mxu1 %v2702_v30  ;;  %v3545_v30 = vand.u32 4294901760, %v2926_v7 }
 0x126   :  { %2233 = vmatmul.mubr.f32.vlgmr.msra.gmra.mxu0 %v2949_v35  ;;  %2270 = vmatprep.subr.mxu0 %v2604_v0 }
 0x127   :  { %2313 = vmatprep.subr.mxu1 %v2604_v0  ;;  %2271 = vmatpush3.msra.mxu0 %v643_v32  ;;  %v1206_v32 = vld [vmem:[%s3525_s5 + $0x78] sm:$0xff] }
 0x128   :  { %2314 = vmatpush3.msra.mxu1 %v2713_v34  ;;  %2272 = vmatprep.subr.mxu0 %v2604_v0  ;;  %v3116_v33 = vand.u32 4294901760, %v1206_v32  ;;  %v1205_v34 = vld [vmem:[%s3525_s5 + $0x70] sm:$0xff] }
 0x129   :  { %2315 = vmatprep.subr.mxu1 %v2604_v0  ;;  %2273 = vmatpush3.msra.mxu0 %v650_v36  ;;  %v3124_v37 = vand.u32 4294901760, %v1205_v34 }
 0x12a   :  { %2316 = vmatpush3.msra.mxu1 %v2726_v38  ;;  %2274 = vmatprep.subr.mxu0 %v2604_v0  ;;  %v3122_v36 = vsub.f32 %v1206_v32, %v3116_v33  ;;  %v1204_v38 = vld [vmem:[%s3525_s5 + $0x68] sm:$0xff] }
 0x12b   :  { %2317 = vmatprep.subr.mxu1 %v2604_v0  ;;  %2275 = vmatpush3.msra.mxu0 %v657_v41  ;;  %v1203_v41 = vld [vmem:[%s3525_s5 + $0x60] sm:$0xff]  ;;  %v3154_v55 = vsub.f32 %v1205_v34, %v3124_v37 }
 0x12c   :  { %2318 = vmatpush3.msra.mxu1 %v2741_v43  ;;  %2276 = vmatprep.subr.mxu0 %v2604_v0  ;;  %v3136_v43 = vand.u32 4294901760, %v1204_v38 }
 0x12d   :  { %2319 = vmatprep.subr.mxu1 %v2604_v0  ;;  %2277 = vmatpush3.msra.mxu0 %v664_v45  ;;  %v3138_v45 = vand.u32 4294901760, %v1203_v41 }
 0x12e   :  { %2320 = vmatpush3.msra.mxu1 %v2753_v47  ;;  %2278 = vmatprep.subr.mxu0 %v2604_v0  ;;  %v1201_v47 = vld [vmem:[%s3525_s5 + $0x50] sm:$0xff] }
 0x12f   :  { %2321 = vmatprep.subr.mxu1 %v2604_v0  ;;  %2279 = vmatpush3.msra.mxu0 %v671_v50  ;;  %v1200_v50 = vld [vmem:[%s3525_s5 + $0x48] sm:$0xff]  ;;  %v3165_v8 = vsub.f32 %v1203_v41, %v3138_v45 }
 0x130   :  { %2322 = vmatpush3.msra.mxu1 %v2826_v6  ;;  %2280 = vmatprep.subr.mxu0 %v2604_v0  ;;  %v3162_v6 = vsub.f32 %v1204_v38, %v3136_v43 }
 0x131   :  { %2323 = vmatprep.subr.mxu1 %v2604_v0  ;;  %2281 = vmatpush3.msra.mxu0 %v678_v54  ;;  %v1308_v54 = vand.u32 4294901760, %v3122_v36 }
 0x132   :  { %2324 = vmatpush3.msra.mxu1 %v2834_v9  ;;  %2282 = vmatprep.subr.mxu0 %v2604_v0  ;;  %v3168_v9 = vsub.f32 %v1202_v42, %v3140_v46 }
 0x133   :  { %2325 = vmatprep.subr.mxu1 %v2604_v0  ;;  %2283 = vmatpush3.msra.mxu0 %v685_v58  ;;  %v3157_v58 = vand.u32 4294901760, %v1201_v47  ;;  %v1309_v12 = vsub.f32 %v3122_v36, %v1308_v54 }
 0x134   :  { %2326 = vmatpush3.msra.mxu1 %v2845_v13  ;;  %2284 = vmatprep.subr.mxu0 %v2604_v0  ;;  %v1315_v13 = vand.u32 4294901760, %v3154_v55  ;;  %v1336_v25 = vand.u32 4294901760, %v3168_v9 }
 0x135   :  { %2327 = vmatprep.subr.mxu1 %v2604_v0  ;;  %2285 = vmatpush3.msra.mxu0 %v692_v61  ;;  %v3159_v61 = vand.u32 4294901760, %v1200_v50 }
 0x136   :  { %2328 = vmatpush3.msra.mxu1 %v2859_v19  ;;  %2286 = vmatprep.subr.mxu0 %v2604_v0  ;;  %v1322_v19 = vand.u32 4294901760, %v3162_v6 }
 0x137   :  { %2329 = vmatprep.subr.mxu1 %v2604_v0  ;;  %2287 = vmatpush3.msra.mxu0 %v699_v11  ;;  %v3171_v11 = vand.u32 4294901760, %v1199_v51  ;;  %v3182_v18 = vsub.f32 %v1200_v50, %v3159_v61 }
 0x138   :  { %2330 = vmatpush3.msra.mxu1 %v2874_v28  ;;  %2288 = vmatprep.subr.mxu0 %v2604_v0  ;;  %v1310_v28 = vand.u32 4294901760, %v1309_v12 }
 0x139   :  { %2331 = vmatprep.subr.mxu1 %v2604_v0  ;;  %2289 = vmatpush3.msra.mxu0 %v706_v17  ;;  %v3178_v17 = vsub.f32 %v1201_v47, %v3157_v58  ;;  %v3194_v56 = vsub.f32 %v1199_v51, %v3171_v11  ;;  %v1350_v5 = vand.u32 4294901760, %v3182_v18  ;;  %v1193_v47 = vld [vmem:[%s3525_s5 + $0x10] sm:$0xff] }
 0x13a   :  { %2332 = vmatpush3.msra.mxu1 %v2884_v44  ;;  %2290 = vmatprep.subr.mxu0 %v2604_v0  ;;  %v1316_v44 = vsub.f32 %v3154_v55, %v1315_v13 }
 0x13b   :  { %2333 = vmatprep.subr.mxu1 %v2604_v0  ;;  %2291 = vmatpush3.msra.mxu0 %v3540_v16  ;;  %v1343_v48 = vand.u32 4294901760, %v3178_v17  ;;  %v1357_v52 = vand.u32 4294901760, %v3194_v56  ;;  %v1351_v60 = vsub.f32 %v3182_v18, %v1350_v5  ;;  %v1195_v16 = vld [vmem:[%s3525_s5 + $0x20] sm:$0xff] }
 0x13c   :  { %2334 = vmatpush3.msra.mxu1 %v2900_v57  ;;  %2292 = vmatprep.subr.mxu0 %v2604_v0  ;;  %v1323_v57 = vsub.f32 %v3162_v6, %v1322_v19  ;;  %v1317_v1 = vand.u32 4294901760, %v1316_v44 }
 0x13d   :  { %2335 = vmatprep.subr.mxu1 %v2604_v0  ;;  %2293 = vmatpush3.msra.mxu0 %v3541_v21  ;;  %v1344_v49 = vsub.f32 %v3178_v17, %v1343_v48  ;;  %v1358_v4 = vsub.f32 %v3194_v56, %v1357_v52  ;;  %v1352_v15 = vand.u32 4294901760, %v1351_v60  ;;  %v1365_v21 = vsub.f32 %v3238_v22, %v1364_v39 }
 0x13e   :  { %2336 = vmatpush3.msra.mxu1 %v2913_v2  ;;  %2337 = vmatprep.mubr.msk.f32.mxu1 %vm2605_vm0, %v2604_v0  ;;  %v1337_v2 = vsub.f32 %v3168_v9, %v1336_v25  ;;  %v1324_v7 = vand.u32 4294901760, %v1323_v57  ;;  %v1192_v57 = vld [vmem:[%s3525_s5 + $0x8] sm:$0xff] }
 0x13f   :  { %2294 = vmatprep.subr.mxu0 %v2604_v0  ;;  %2338 = vmatmul.mubr.f32.vlgmr.msra.gmra.mxu1 %v2946_v24  ;;  %v1345_v3 = vand.u32 4294901760, %v1344_v49  ;;  %v1359_v35 = vand.u32 4294901760, %v1358_v4  ;;  %v1366_v32 = vand.u32 4294901760, %v1365_v21  ;;  %v1191_v49 = vld [vmem:[%s3525_s5] sm:$0xff] }
 0x140   :  { %2295 = vmatpush3.msra.mxu0 %v3542_v26  ;;  %2302 = vmatprep.mubr.msk.f32.mxu0 %vm2605_vm0, %v2604_v0  ;;  %v1338_v53 = vand.u32 4294901760, %v1337_v2  ;;  %v1371_v26 = vand.u32 4294901760, %v3250_v59 }
 0x141   :  { %2296 = vmatprep.subr.mxu0 %v2604_v0  ;;  %2375 = vmatprep.subr.mxu1 %v2604_v0 }
 0x142   :  { %2297 = vmatpush3.msra.mxu0 %v3543_v27  ;;  %2407 = vmatprep.mubr.msk.f32.mxu1 %vm2605_vm0, %v2604_v0  ;;  %v3265_v27 = vsub.f32 %v1196_v31, %v3252_v40  ;;  %v1372_v34 = vsub.f32 %v3250_v59, %v1371_v26 }
 0x143   :  { %2298 = vmatprep.subr.mxu0 %v2604_v0  ;;  %2376 = vmatpush3.msra.mxu1 %v1310_v28  ;;  %v3294_v28 = vand.u32 4294901760, %v1193_v47 }
 0x144   :  { %2299 = vmatpush3.msra.mxu0 %v3544_v29  ;;  %2377 = vmatprep.subr.mxu1 %v2604_v0  ;;  %v3267_v29 = vand.u32 4294901760, %v1195_v16  ;;  %v3539_v38 = vand.u32 4294901760, %v3265_v27  ;;  %v1373_v50 = vand.u32 4294901760, %v1372_v34 }
 0x145   :  { %2300 = vmatprep.subr.mxu0 %v2604_v0  ;;  %2378 = vmatpush3.msra.mxu1 %v1317_v1  ;;  %v3308_v2 = vsub.f32 %v1193_v47, %v3294_v28 }
 0x146   :  { %2301 = vmatpush3.msra.mxu0 %v3545_v30  ;;  %2379 = vmatprep.subr.mxu1 %v2604_v0  ;;  %v1194_v30 = vld [vmem:[%s3525_s5 + $0x18] sm:$0xff]  ;;  %v3280_v41 = vsub.f32 %v1195_v16, %v3267_v29  ;;  %v1379_v51 = vsub.f32 %v3265_v27, %v3539_v38 }
 0x147   :  { %2303 = vmatmul.mubr.f32.vlgmr.msra.gmra.mxu0 %v2946_v24  ;;  %2340 = vmatprep.subr.mxu0 %v2604_v0  ;;  %v1329_v24 = vand.u32 4294901760, %v3165_v8  ;;  %v3284_v42 = vand.u32 4294901760, %v1194_v30  ;;  %v3536_v60 = vand.u32 4294901760, %v3308_v2 }
 0x148   :  { %2372 = vmatprep.mubr.msk.f32.mxu0 %vm2605_vm0, %v2604_v0  ;;  %2341 = vmatpush3.msra.mxu0 %v3116_v33  ;;  %v3538_v12 = vand.u32 4294901760, %v3280_v41 }
 0x149   :  { %2342 = vmatprep.subr.mxu0 %v2604_v0  ;;  %v1330_v63 = vsub.f32 %v3165_v8, %v1329_v24  ;;  %2380 = vmatpush3.msra.mxu1 %v1324_v7  ;;  %v3298_v44 = vsub.f32 %v1194_v30, %v3284_v42  ;;  %v3310_v7 = vand.u32 4294901760, %v1192_v57  ;;  %v1400_v14 = vsub.f32 %v3308_v2, %v3536_v60 }
 0x14a   :  { %2343 = vmatpush3.msra.mxu0 %v3124_v37  ;;  %2381 = vmatprep.subr.mxu1 %v2604_v0  ;;  %v1386_v1 = vsub.f32 %v3280_v41, %v3538_v12 }
 0x14b   :  { %2344 = vmatprep.subr.mxu0 %v2604_v0  ;;  %v1331_v20 = vand.u32 4294901760, %v1330_v63  ;;  %v1380_v63 = vand.u32 4294901760, %v1379_v51  ;;  %v3321_v62 = vsub.f32 %v1192_v57, %v3310_v7  ;;  %v1401_v16 = vand.u32 4294901760, %v1400_v14  ;;  %v1864_v14 = vld [vmem:[#allocation4] ss:$0 sm:$0xff] }
 0x14c   :  { %2345 = vmatpush3.msra.mxu0 %v3136_v43 }
 0x14d   :  { %2346 = vmatprep.subr.mxu0 %v2604_v0  ;;  %2382 = vmatpush3.msra.mxu1 %v1331_v20  ;;  %v3537_v20 = vand.u32 4294901760, %v3298_v44 }
 0x14e   :  { %2347 = vmatpush3.msra.mxu0 %v3138_v45  ;;  %2383 = vmatprep.subr.mxu1 %v2604_v0 }
 0x14f   :  { %2348 = vmatprep.subr.mxu0 %v2604_v0  ;;  %2384 = vmatpush3.msra.mxu1 %v1338_v53  ;;  %v1387_v53 = vand.u32 4294901760, %v1386_v1  ;;  %v1393_v4 = vsub.f32 %v3298_v44, %v3537_v20 }
 0x150   :  { %2349 = vmatpush3.msra.mxu0 %v3140_v46  ;;  %2385 = vmatprep.subr.mxu1 %v2604_v0 }
 0x151   :  { %2350 = vmatprep.subr.mxu0 %v2604_v0  ;;  %2386 = vmatpush3.msra.mxu1 %v1345_v3  ;;  %v3323_v3 = vand.u32 4294901760, %v1191_v49 }
 0x152   :  { %2351 = vmatpush3.msra.mxu0 %v3157_v58  ;;  %2387 = vmatprep.subr.mxu1 %v2604_v0 }
 0x153   :  { %2352 = vmatprep.subr.mxu0 %v2604_v0  ;;  %2388 = vmatpush3.msra.mxu1 %v1352_v15  ;;  %v3535_v15 = vand.u32 4294901760, %v3321_v62  ;;  %v3336_v31 = vsub.f32 %v1191_v49, %v3323_v3 }
 0x154   :  { %2353 = vmatpush3.msra.mxu0 %v3159_v61  ;;  %2389 = vmatprep.subr.mxu1 %v2604_v0 }
 0x155   :  { %2354 = vmatprep.subr.mxu0 %v2604_v0  ;;  %2390 = vmatpush3.msra.mxu1 %v1359_v35  ;;  %v1394_v35 = vand.u32 4294901760, %v1393_v4  ;;  %v1407_v21 = vsub.f32 %v3321_v62, %v3535_v15  ;;  %v3534_v30 = vand.u32 4294901760, %v3336_v31 }
 0x156   :  { %2355 = vmatpush3.msra.mxu0 %v3171_v11  ;;  %2391 = vmatprep.subr.mxu1 %v2604_v0 }
 0x157   :  { %2356 = vmatprep.subr.mxu0 %v2604_v0  ;;  %2392 = vmatpush3.msra.mxu1 %v1366_v32  ;;  %v1408_v32 = vand.u32 4294901760, %v1407_v21  ;;  %v1414_v34 = vsub.f32 %v3336_v31, %v3534_v30 }
 0x158   :  { %2357 = vmatpush3.msra.mxu0 %v3229_v10  ;;  %2393 = vmatprep.subr.mxu1 %v2604_v0 }
 0x159   :  { %2358 = vmatprep.subr.mxu0 %v2604_v0  ;;  %2394 = vmatpush3.msra.mxu1 %v1373_v50  ;;  %v1415_v47 = vand.u32 4294901760, %v1414_v34 }
 0x15a   :  { %2359 = vmatpush3.msra.mxu0 %v3240_v23  ;;  %2395 = vmatprep.subr.mxu1 %v2604_v0 }
 0x15b   :  { %2360 = vmatprep.subr.mxu0 %v2604_v0  ;;  %2396 = vmatpush3.msra.mxu1 %v1380_v63 }
 0x15c   :  { %2361 = vmatpush3.msra.mxu0 %v3252_v40  ;;  %2397 = vmatprep.subr.mxu1 %v2604_v0 }
 0x15d   :  { %2362 = vmatprep.subr.mxu0 %v2604_v0  ;;  %2398 = vmatpush3.msra.mxu1 %v1387_v53 }
 0x15e   :  { %2363 = vmatpush3.msra.mxu0 %v3267_v29  ;;  %2399 = vmatprep.subr.mxu1 %v2604_v0 }
 0x15f   :  { %2364 = vmatprep.subr.mxu0 %v2604_v0  ;;  %2400 = vmatpush3.msra.mxu1 %v1394_v35 }
 0x160   :  { %2365 = vmatpush3.msra.mxu0 %v3284_v42  ;;  %2401 = vmatprep.subr.mxu1 %v2604_v0 }
 0x161   :  { %2366 = vmatprep.subr.mxu0 %v2604_v0  ;;  %2402 = vmatpush3.msra.mxu1 %v1401_v16 }
 0x162   :  { %2367 = vmatpush3.msra.mxu0 %v3294_v28  ;;  %2403 = vmatprep.subr.mxu1 %v2604_v0 }
 0x163   :  { %2368 = vmatprep.subr.mxu0 %v2604_v0  ;;  %2404 = vmatpush3.msra.mxu1 %v1408_v32 }
 0x164   :  { %2369 = vmatpush3.msra.mxu0 %v3310_v7  ;;  %2405 = vmatprep.subr.mxu1 %v2604_v0 }
 0x165   :  { %2370 = vmatprep.subr.mxu0 %v2604_v0  ;;  %2406 = vmatpush3.msra.mxu1 %v1415_v47 }
 0x166   :  { %2371 = vmatpush3.msra.mxu0 %v3323_v3  ;;  %2445 = vmatprep.subr.mxu1 %v2604_v0 }
 0x167   :  { %2410 = vmatprep.subr.mxu0 %v2604_v0 }
 0x1bd   :  { %v787_v50 = vpop.f32.mrf.mxu1 }
 0x1bf   :  { %v2199_v51 = vpop.f32.mrf.mxu1 }
 0x1c5   :  { %v636_v57 = vpop.f32.mrf.mxu0 }
 0x1c6   :  { %v637_v35 = vadd.f32 %v1864_v14, %v636_v57 }
 0x1c7   :  { %v2164_v63 = vpop.f32.mrf.mxu0 }
 0x1c8   :  { %v788_v21 = vadd.f32 %v787_v50, %v637_v35 }
 0x1dd   :  { %v980_v1 = vpop.f32.mrf.mxu1 }
 0x1df   :  { %v2269_v49 = vpop.f32.mrf.mxu1 }
 0x1e6   :  { %v891_v53 = vpop.f32.mrf.mxu0 }
 0x1e7   :  { %v892_v34 = vadd.f32 %v891_v53, %v788_v21 }
 0x1e8   :  { %v2234_v4 = vpop.f32.mrf.mxu0 }
 0x1e9   :  { %v981_v32 = vadd.f32 %v980_v1, %v892_v34 }
 0x1ff   :  { %v1186_v16 = vpop.f32.mrf.mxu1 }
 0x201   :  { %v2339_v30 = vpop.f32.mrf.mxu1 }
 0x207   :  { %v1099_v15 = vpop.f32.mrf.mxu0 }
 0x208   :  { %v1100_v60 = vadd.f32 %v1099_v15, %v981_v32 }
 0x209   :  { %v2304_v47 = vpop.f32.mrf.mxu0 }
 0x20a   :  { %v1187_v20 = vadd.f32 %v1186_v16, %v1100_v60 }
 0x20c   :  { %v1190_v12 = vmax.f32 %v1187_v20, 0.0 }
 0x20e   :  { %v3353_v38 = vand.u32 4294901760, %v1190_v12 }
 0x210   :  { %v3356_v51 = vsub.f32 %v1190_v12, %v3353_v38  ;;  %2408 = vmatmul.mubr.f32.vlgmr.msra.gmra.mxu1 %v3353_v38 }
 0x211   :  { %2446 = vmatpush3.msra.mxu1 %v3116_v33  ;;  %2477 = vmatprep.mubr.msk.f32.mxu1 %vm2605_vm0, %v2604_v0 }
 0x212   :  { %v1297_v30 = vand.u32 4294901760, %v3356_v51  ;;  %2447 = vmatprep.subr.mxu1 %v2604_v0 }
 0x213   :  { %2448 = vmatpush3.msra.mxu1 %v3124_v37 }
 0x214   :  { %2449 = vmatprep.subr.mxu1 %v2604_v0  ;;  %v1298_v20 = vsub.f32 %v3356_v51, %v1297_v30 }
 0x215   :  { %2450 = vmatpush3.msra.mxu1 %v3136_v43 }
 0x216   :  { %2451 = vmatprep.subr.mxu1 %v2604_v0  ;;  %v1299_v12 = vand.u32 4294901760, %v1298_v20 }
 0x217   :  { %2452 = vmatpush3.msra.mxu1 %v3138_v45 }
 0x218   :  { %2453 = vmatprep.subr.mxu1 %v2604_v0  ;;  %2373 = vmatmul.mubr.f32.vlgmr.msra.gmra.mxu0 %v1299_v12 }
 0x219   :  { %2411 = vmatpush3.msra.mxu0 %v3122_v36  ;;  %2454 = vmatpush3.msra.mxu1 %v3140_v46  ;;  %v3547_v36 = vand.u32 4294901760, %v3280_v41 }
 0x21a   :  { %2412 = vmatprep.subr.mxu0 %v2604_v0  ;;  %2455 = vmatprep.subr.mxu1 %v2604_v0 }
 0x21b   :  { %2413 = vmatpush3.msra.mxu0 %v3154_v55  ;;  %2456 = vmatpush3.msra.mxu1 %v3157_v58 }
 0x21c   :  { %2414 = vmatprep.subr.mxu0 %v2604_v0  ;;  %2457 = vmatprep.subr.mxu1 %v2604_v0 }
 0x21d   :  { %2415 = vmatpush3.msra.mxu0 %v3162_v6  ;;  %2458 = vmatpush3.msra.mxu1 %v3159_v61 }
 0x21e   :  { %2416 = vmatprep.subr.mxu0 %v2604_v0  ;;  %2459 = vmatprep.subr.mxu1 %v2604_v0 }
 0x21f   :  { %2417 = vmatpush3.msra.mxu0 %v3165_v8  ;;  %2460 = vmatpush3.msra.mxu1 %v3171_v11 }
 0x220   :  { %2418 = vmatprep.subr.mxu0 %v2604_v0  ;;  %2461 = vmatprep.subr.mxu1 %v2604_v0 }
 0x221   :  { %2419 = vmatpush3.msra.mxu0 %v3168_v9  ;;  %2462 = vmatpush3.msra.mxu1 %v3229_v10 }
 0x222   :  { %2420 = vmatprep.subr.mxu0 %v2604_v0  ;;  %2463 = vmatprep.subr.mxu1 %v2604_v0 }
 0x223   :  { %2421 = vmatpush3.msra.mxu0 %v3178_v17  ;;  %2464 = vmatpush3.msra.mxu1 %v3240_v23 }
 0x224   :  { %2422 = vmatprep.subr.mxu0 %v2604_v0  ;;  %2465 = vmatprep.subr.mxu1 %v2604_v0 }
 0x225   :  { %2423 = vmatpush3.msra.mxu0 %v3182_v18  ;;  %2466 = vmatpush3.msra.mxu1 %v3252_v40 }
 0x226   :  { %2424 = vmatprep.subr.mxu0 %v2604_v0  ;;  %2467 = vmatprep.subr.mxu1 %v2604_v0 }
 0x227   :  { %2425 = vmatpush3.msra.mxu0 %v3194_v56  ;;  %2468 = vmatpush3.msra.mxu1 %v3267_v29 }
 0x228   :  { %2426 = vmatprep.subr.mxu0 %v2604_v0  ;;  %2469 = vmatprep.subr.mxu1 %v2604_v0 }
 0x229   :  { %2427 = vmatpush3.msra.mxu0 %v3238_v22  ;;  %2470 = vmatpush3.msra.mxu1 %v3284_v42 }
 0x22a   :  { %2428 = vmatprep.subr.mxu0 %v2604_v0  ;;  %2471 = vmatprep.subr.mxu1 %v2604_v0 }
 0x22b   :  { %2429 = vmatpush3.msra.mxu0 %v3250_v59  ;;  %2472 = vmatpush3.msra.mxu1 %v3294_v28 }
 0x22c   :  { %2430 = vmatprep.subr.mxu0 %v2604_v0  ;;  %2473 = vmatprep.subr.mxu1 %v2604_v0 }
 0x22d   :  { %2431 = vmatpush3.msra.mxu0 %v3265_v27  ;;  %2474 = vmatpush3.msra.mxu1 %v3310_v7 }
 0x22e   :  { %2432 = vmatprep.subr.mxu0 %v2604_v0  ;;  %2475 = vmatprep.subr.mxu1 %v2604_v0 }
 0x22f   :  { %2433 = vmatpush3.msra.mxu0 %v3280_v41  ;;  %2476 = vmatpush3.msra.mxu1 %v3323_v3 }
 0x230   :  { %2434 = vmatprep.subr.mxu0 %v2604_v0  ;;  %2478 = vmatmul.mubr.f32.vlgmr.msra.gmra.mxu1 %v1297_v30 }
 0x231   :  { %2515 = vmatprep.subr.mxu1 %v2604_v0  ;;  %2435 = vmatpush3.msra.mxu0 %v3298_v44 }
 0x232   :  { %2516 = vmatpush3.msra.mxu1 %v3116_v33  ;;  %2436 = vmatprep.subr.mxu0 %v2604_v0  ;;  %v3546_v33 = vand.u32 4294901760, %v3265_v27 }
 0x233   :  { %2517 = vmatprep.subr.mxu1 %v2604_v0  ;;  %2437 = vmatpush3.msra.mxu0 %v3308_v2 }
 0x234   :  { %2518 = vmatpush3.msra.mxu1 %v3124_v37  ;;  %2438 = vmatprep.subr.mxu0 %v2604_v0  ;;  %v3548_v37 = vand.u32 4294901760, %v3298_v44 }
 0x235   :  { %2519 = vmatprep.subr.mxu1 %v2604_v0  ;;  %2439 = vmatpush3.msra.mxu0 %v3321_v62 }
 0x236   :  { %2520 = vmatpush3.msra.mxu1 %v3136_v43  ;;  %2440 = vmatprep.subr.mxu0 %v2604_v0  ;;  %v3549_v43 = vand.u32 4294901760, %v3308_v2 }
 0x237   :  { %2521 = vmatprep.subr.mxu1 %v2604_v0  ;;  %2441 = vmatpush3.msra.mxu0 %v3336_v31 }
 0x238   :  { %2442 = vmatprep.mubr.msk.f32.mxu0 %vm2605_vm0, %v2604_v0  ;;  %2522 = vmatpush3.msra.mxu1 %v3138_v45  ;;  %v3550_v45 = vand.u32 4294901760, %v3321_v62 }
 0x239   :  { %2443 = vmatmul.mubr.f32.vlgmr.msra.gmra.mxu0 %v3356_v51  ;;  %2480 = vmatprep.subr.mxu0 %v2604_v0 }
 0x23a   :  { %2523 = vmatprep.subr.mxu1 %v2604_v0  ;;  %2481 = vmatpush3.msra.mxu0 %v1308_v54 }
 0x23b   :  { %2524 = vmatpush3.msra.mxu1 %v3140_v46  ;;  %2482 = vmatprep.subr.mxu0 %v2604_v0  ;;  %v3551_v46 = vand.u32 4294901760, %v3336_v31 }
 0x23c   :  { %2525 = vmatprep.subr.mxu1 %v2604_v0  ;;  %2483 = vmatpush3.msra.mxu0 %v1315_v13  ;;  %v1865_v13 = vld [vmem:[%s3526_s6] ss:$0 sm:$0xff] }
 0x23d   :  { %2526 = vmatpush3.msra.mxu1 %v3157_v58  ;;  %2484 = vmatprep.subr.mxu0 %v2604_v0 }
 0x23e   :  { %2527 = vmatprep.subr.mxu1 %v2604_v0  ;;  %2485 = vmatpush3.msra.mxu0 %v1322_v19 }
 0x23f   :  { %2528 = vmatpush3.msra.mxu1 %v3159_v61  ;;  %2486 = vmatprep.subr.mxu0 %v2604_v0 }
 0x240   :  { %2529 = vmatprep.subr.mxu1 %v2604_v0  ;;  %2487 = vmatpush3.msra.mxu0 %v1329_v24 }
 0x241   :  { %2530 = vmatpush3.msra.mxu1 %v3171_v11  ;;  %2488 = vmatprep.subr.mxu0 %v2604_v0 }
 0x242   :  { %2531 = vmatprep.subr.mxu1 %v2604_v0  ;;  %2489 = vmatpush3.msra.mxu0 %v1336_v25 }
 0x243   :  { %2532 = vmatpush3.msra.mxu1 %v3229_v10  ;;  %2490 = vmatprep.subr.mxu0 %v2604_v0 }
 0x244   :  { %2533 = vmatprep.subr.mxu1 %v2604_v0  ;;  %2491 = vmatpush3.msra.mxu0 %v1343_v48 }
 0x245   :  { %2534 = vmatpush3.msra.mxu1 %v3240_v23  ;;  %2492 = vmatprep.subr.mxu0 %v2604_v0 }
 0x246   :  { %2535 = vmatprep.subr.mxu1 %v2604_v0  ;;  %2493 = vmatpush3.msra.mxu0 %v1350_v5 }
 0x247   :  { %2536 = vmatpush3.msra.mxu1 %v3252_v40  ;;  %2494 = vmatprep.subr.mxu0 %v2604_v0 }
 0x248   :  { %2537 = vmatprep.subr.mxu1 %v2604_v0  ;;  %2495 = vmatpush3.msra.mxu0 %v1357_v52 }
 0x249   :  { %2538 = vmatpush3.msra.mxu1 %v3267_v29  ;;  %2496 = vmatprep.subr.mxu0 %v2604_v0 }
 0x24a   :  { %2539 = vmatprep.subr.mxu1 %v2604_v0  ;;  %2497 = vmatpush3.msra.mxu0 %v1364_v39 }
 0x24b   :  { %2540 = vmatpush3.msra.mxu1 %v3284_v42  ;;  %2498 = vmatprep.subr.mxu0 %v2604_v0 }
 0x24c   :  { %2541 = vmatprep.subr.mxu1 %v2604_v0  ;;  %2499 = vmatpush3.msra.mxu0 %v1371_v26 }
 0x24d   :  { %2542 = vmatpush3.msra.mxu1 %v3294_v28  ;;  %2500 = vmatprep.subr.mxu0 %v2604_v0 }
 0x24e   :  { %2543 = vmatprep.subr.mxu1 %v2604_v0  ;;  %2501 = vmatpush3.msra.mxu0 %v3546_v33 }
 0x24f   :  { %2544 = vmatpush3.msra.mxu1 %v3310_v7  ;;  %2502 = vmatprep.subr.mxu0 %v2604_v0 }
 0x250   :  { %2545 = vmatprep.subr.mxu1 %v2604_v0  ;;  %2503 = vmatpush3.msra.mxu0 %v3547_v36 }
 0x251   :  { %2546 = vmatpush3.msra.mxu1 %v3323_v3  ;;  %2547 = vmatprep.mubr.msk.f32.mxu1 %vm2605_vm0, %v2604_v0 }
 0x252   :  { %2504 = vmatprep.subr.mxu0 %v2604_v0  ;;  %2548 = vmatmul.mubr.f32.vlgmr.msra.gmra.mxu1 %v3353_v38 }
 0x253   :  { %2505 = vmatpush3.msra.mxu0 %v3548_v37  ;;  %2512 = vmatprep.mubr.msk.f32.mxu0 %vm2605_vm0, %v2604_v0 }
 0x254   :  { %2506 = vmatprep.subr.mxu0 %v2604_v0 }
 0x255   :  { %2507 = vmatpush3.msra.mxu0 %v3549_v43 }
 0x256   :  { %2508 = vmatprep.subr.mxu0 %v2604_v0 }
 0x257   :  { %2509 = vmatpush3.msra.mxu0 %v3550_v45 }
 0x258   :  { %2510 = vmatprep.subr.mxu0 %v2604_v0 }
 0x259   :  { %2511 = vmatpush3.msra.mxu0 %v3551_v46 }
 0x25a   :  { %2513 = vmatmul.mubr.f32.vlgmr.msra.gmra.mxu0 %v3353_v38 }
 0x2d0   :  { %v1452_v54 = vpop.f32.mrf.mxu1 }
 0x2d2   :  { %v2409_v55 = vpop.f32.mrf.mxu1 }
 0x2d8   :  { %v1301_v58 = vpop.f32.mrf.mxu0 }
 0x2d9   :  { %v1302_v17 = vadd.f32 %v1865_v13, %v1301_v58 }
 0x2da   :  { %v2374_v61 = vpop.f32.mrf.mxu0 }
 0x2db   :  { %v1453_v0 = vadd.f32 %v1452_v54, %v1302_v17 }
 0x2f0   :  { %v1645_v6 = vpop.f32.mrf.mxu1 }
 0x2f2   :  { %v2479_v8 = vpop.f32.mrf.mxu1 }
 0x2f9   :  { %v1556_v9 = vpop.f32.mrf.mxu0 }
 0x2fa   :  { %v1557_v24 = vadd.f32 %v1556_v9, %v1453_v0 }
 0x2fb   :  { %v2444_v11 = vpop.f32.mrf.mxu0 }
 0x2fc   :  { %v1646_v25 = vadd.f32 %v1645_v6, %v1557_v24 }
 0x312   :  { %v1851_v18 = vpop.f32.mrf.mxu1 }
 0x314   :  { %v2549_v19 = vpop.f32.mrf.mxu1 }
 0x31a   :  { %v1764_v48 = vpop.f32.mrf.mxu0 }
 0x31b   :  { %v1765_v56 = vadd.f32 %v1764_v48, %v1646_v25 }
 0x31c   :  { %v2514_v5 = vpop.f32.mrf.mxu0 }
 0x31d   :  { %v1852_v52 = vadd.f32 %v1851_v18, %v1765_v56 }
 0x31f   :  { %1856 = vst.msk [vmem:[%s3527_s7] sm:$0xff] %vm1855_vm2, %v1852_v52 }
 0x320   :  { %1861 = vsyncpa [#allocation3], 1 }
 0x321   :  { %1862 = vsyncpa [#allocation5], 1 }

</bundles_post_ra>
